<compile_context>
chip_gen: v5e
topology: v5e:2x2
jax: 0.10.0
libtpu: 0.0.40
codegen_flags: <defaults>
</compile_context>

<pallas_src>
import jax
import jax.numpy as jnp
from jax.experimental import pallas as pl
from jax.experimental.pallas import tpu as pltpu


def mynet_kernel(x_ref, w1_ref, b1_ref, w2_ref, b2_ref, o_ref):
    # fc1: h = x @ W1 + b1   (f32 accumulation on the MXU)
    h = jnp.dot(x_ref[...], w1_ref[...],
                preferred_element_type=jnp.float32) + b1_ref[...]
    # fc2: y = h @ W2 + b2   (same rounding order as the PyTorch reference)
    y = jnp.dot(h.astype(w2_ref.dtype), w2_ref[...],
                preferred_element_type=jnp.float32) + b2_ref[...]
    o_ref[...] = y.astype(o_ref.dtype)


def mynet_forward(x, w1, b1, w2, b2, *, batch_block=256):
    """fc2(fc1(x)); weights stored as [D_in, D_out], biases as [1, D]."""
    B, D_in = x.shape
    D_hid = w1.shape[1]
    D_out = w2.shape[1]

    if B >= batch_block and B % batch_block == 0:
        # Large-batch path: tile the batch so v7x's second TensorCore gets work.
        return pl.pallas_call(
            mynet_kernel,
            out_shape=jax.ShapeDtypeStruct((B, D_out), x.dtype),
            grid=(B // batch_block,),
            in_specs=[
                pl.BlockSpec((batch_block, D_in), lambda i: (i, 0)),
                pl.BlockSpec((D_in, D_hid), lambda i: (0, 0)),
                pl.BlockSpec((1, D_hid), lambda i: (0, 0)),
                pl.BlockSpec((D_hid, D_out), lambda i: (0, 0)),
                pl.BlockSpec((1, D_out), lambda i: (0, 0)),
            ],
            out_specs=pl.BlockSpec((batch_block, D_out), lambda i: (i, 0)),
            compiler_params=pltpu.CompilerParams(
                dimension_semantics=("parallel",)),
        )(x, w1, b1, w2, b2)

    # Small-batch path: all operands resident in VMEM, single invocation,
    # no padding / slicing (whole-array blocks bypass the (8,128) rule).
    vmem = pl.BlockSpec(memory_space=pltpu.MemorySpace.VMEM)
    return pl.pallas_call(
        mynet_kernel,
        out_shape=jax.ShapeDtypeStruct((B, D_out), x.dtype),
        in_specs=[vmem, vmem, vmem, vmem, vmem],
        out_specs=vmem,
    )(x, w1, b1, w2, b2)


if __name__ == "__main__":
    B, D_IN, D_HID, D_OUT = 4, 32, 64, 16

    key = jax.random.PRNGKey(0)
    kx, kw1, kb1, kw2, kb2 = jax.random.split(key, 5)

    x = jax.random.normal(kx, (B, D_IN), dtype=jnp.float32)
    # Deterministic param init (mimic nn.Linear's uniform(-1/sqrt(fan_in), ...)).
    w1 = jax.random.uniform(kw1, (D_IN, D_HID), jnp.float32,
                            -1.0 / jnp.sqrt(D_IN), 1.0 / jnp.sqrt(D_IN))
    b1 = jax.random.uniform(kb1, (1, D_HID), jnp.float32,
                            -1.0 / jnp.sqrt(D_IN), 1.0 / jnp.sqrt(D_IN))
    w2 = jax.random.uniform(kw2, (D_HID, D_OUT), jnp.float32,
                            -1.0 / jnp.sqrt(D_HID), 1.0 / jnp.sqrt(D_HID))
    b2 = jax.random.uniform(kb2, (1, D_OUT), jnp.float32,
                            -1.0 / jnp.sqrt(D_HID), 1.0 / jnp.sqrt(D_HID))

    y = mynet_forward(x, w1, b1, w2, b2)
    jax.block_until_ready(y)

    # Reference check in plain JAX (two-layer form, same rounding order).
    y_ref = (x @ w1 + b1) @ w2 + b2
    assert y.shape == (B, D_OUT)
    assert jnp.allclose(y, y_ref, atol=1e-5, rtol=1e-5)

    print("KERNEL_OK")
</pallas_src>

<mosaic_0001>
module attributes {stable_mosaic.version = 11 : i64} {
  func.func @mynet_kernel(%arg0: memref<4x32xf32, #tpu.memory_space<vmem>>, %arg1: memref<32x64xf32, #tpu.memory_space<vmem>>, %arg2: memref<1x64xf32, #tpu.memory_space<vmem>>, %arg3: memref<64x16xf32, #tpu.memory_space<vmem>>, %arg4: memref<1x16xf32, #tpu.memory_space<vmem>>, %arg5: memref<4x16xf32, #tpu.memory_space<vmem>>) attributes {dimension_semantics = [], scalar_prefetch = 0 : i64, scratch_operands = 0 : i64, tpu.core_type = #tpu.core_type<tc>} {
    %c0 = arith.constant 0 : index
    %c0_0 = arith.constant 0 : index
    %0 = vector.load %arg0[%c0, %c0_0] : memref<4x32xf32, #tpu.memory_space<vmem>>, vector<4x32xf32>
    %c0_1 = arith.constant 0 : index
    %c0_2 = arith.constant 0 : index
    %1 = vector.load %arg1[%c0_1, %c0_2] : memref<32x64xf32, #tpu.memory_space<vmem>>, vector<32x64xf32>
    %cst = arith.constant dense<0.000000e+00> : vector<4x64xf32>
    %2 = tpu.matmul %0, %1, %cst {dimension_numbers = #tpu.dot_dimension_numbers<[1], [0], [0], [1], [0, 0, 1, 1], [], []>} : vector<4x32xf32>, vector<32x64xf32>, vector<4x64xf32> -> vector<4x64xf32>
    %c0_3 = arith.constant 0 : index
    %c0_4 = arith.constant 0 : index
    %3 = vector.load %arg2[%c0_3, %c0_4] : memref<1x64xf32, #tpu.memory_space<vmem>>, vector<1x64xf32>
    %4 = vector.broadcast %3 : vector<1x64xf32> to vector<4x64xf32>
    %5 = arith.addf %2, %4 : vector<4x64xf32>
    %c0_5 = arith.constant 0 : index
    %c0_6 = arith.constant 0 : index
    %6 = vector.load %arg3[%c0_5, %c0_6] : memref<64x16xf32, #tpu.memory_space<vmem>>, vector<64x16xf32>
    %cst_7 = arith.constant dense<0.000000e+00> : vector<4x16xf32>
    %7 = tpu.matmul %5, %6, %cst_7 {dimension_numbers = #tpu.dot_dimension_numbers<[1], [0], [0], [1], [0, 0, 1, 1], [], []>} : vector<4x64xf32>, vector<64x16xf32>, vector<4x16xf32> -> vector<4x16xf32>
    %c0_8 = arith.constant 0 : index
    %c0_9 = arith.constant 0 : index
    %8 = vector.load %arg4[%c0_8, %c0_9] : memref<1x16xf32, #tpu.memory_space<vmem>>, vector<1x16xf32>
    %9 = vector.broadcast %8 : vector<1x16xf32> to vector<4x16xf32>
    %10 = arith.addf %7, %9 : vector<4x16xf32>
    %c0_10 = arith.constant 0 : index
    %c0_11 = arith.constant 0 : index
    %11 = vector.load %arg5[%c0_10, %c0_11] : memref<4x16xf32, #tpu.memory_space<vmem>>, vector<4x16xf32>
    tpu.vector_store %arg5[%c0_10, %c0_11], %10 {strides = array<i32>} : memref<4x16xf32, #tpu.memory_space<vmem>>, vector<4x16xf32>,
    return
  }
}

</mosaic_0001>

<bundles_post_ra>
// kernel: tpu_custom_call.1
= control target key start
LH: loop header
LB: loop body
LE: loop exit
PB: predicated region body
PF: predicated region fallthrough
CT: control target
= control target key end

     0   :  { %s218_s0 = inlined_call_operand.vmem [shape: f32[4,32], index: 0, kind: input, shape index: {}]   ;;  %s219_s1 = inlined_call_operand.vmem [shape: f32[32,64], index: 1, kind: input, shape index: {}]   ;;  %s220_s2 = inlined_call_operand.vmem [shape: f32[1,64], index: 2, kind: input, shape index: {}]   ;;  %s221_s3 = inlined_call_operand.vmem [shape: f32[64,16], index: 3, kind: input, shape index: {}]   ;;  %s222_s4 = inlined_call_operand.vmem [shape: f32[1,16], index: 4, kind: input, shape index: {}]   ;;  %s223_s5 = inlined_call_operand.hbm [shape: f32[4,16], index: 5, kind: output, shape index: {}]  }
   0x1   :  { %v25_v0 = vld [vmem:[%s219_s1 + $0x18] sm:$0xff]  ;;  %v24_v1 = vld [vmem:[%s219_s1 + $0x10] sm:$0xff]  ;;  %v23_v3 = vld [vmem:[%s219_s1 + $0x8] sm:$0xff] }
   0x2   :  { %46 = vmatpush.msra.mxu0 %v25_v0  ;;  %v61_v2 = vld [vmem:[%s221_s3 + $0x38] sm:$0xff]  ;;  %v60_v4 = vld [vmem:[%s221_s3 + $0x30] sm:$0xff]  ;;  %v59_v5 = vld [vmem:[%s221_s3 + $0x28] sm:$0xff] }
   0x3   :  { %78 = vmatpush.msra.mxu1 %v61_v2  ;;  %v22_v6 = vld [vmem:[%s219_s1] sm:$0xff] }
   0x4   :  { %47 = vmatpush.msra.mxu0 %v24_v1 }
   0x5   :  { %79 = vmatpush.msra.mxu1 %v60_v4 }
   0x6   :  { %10 = vsyncpa [#allocation3], 0  ;;  %48 = vmatpush.msra.mxu0 %v23_v3  ;;  %v21_v7 = vld [vmem:[%s218_s0] sm:$0xf]  ;;  %vm30_vm0 = vcmask 261120   ;;  %v57_v9 = vld [vmem:[%s221_s3 + $0x18] sm:$0xff] }
   0x7   :  { %v58_v8 = vld [vmem:[%s221_s3 + $0x20] sm:$0xff]  ;;  %80 = vmatpush.msra.mxu1 %v59_v5  ;;  %v56_v10 = vld [vmem:[%s221_s3 + $0x10] sm:$0xff]  ;;  %v55_v11 = vld [vmem:[%s221_s3 + $0x8] sm:$0xff]  ;;  %vm66_vm1 = vcmask 523264   ;;  %s139_s21 = smov [#allocation2]   ;;  %s99_s25 = sshll.u32 %s223_s5, 4  ;;  %s100_s25 = int_to_ptr.hbm [resolvable:$true] %s99_s25 }
   0x8   :  { %49 = vmatpush.msra.mxu0 %v22_v6  ;;  %v54_v12 = vld [vmem:[%s221_s3] sm:$0xff]  ;;  %s97_s22 = sshll.u32 %s139_s21, 4  ;;  %vm90_vm2 = vcmask 125952   ;;  %s98_s22 = int_to_ptr.vmem [resolvable:$true] %s97_s22 }
   0x9   :  { %108 = vmatmul.msk.f32.vlgmr.msra.gmra.mxu0 %vm30_vm0, %v21_v7  ;;  %81 = vmatpush.msra.mxu1 %v58_v8  ;;  %v111_v13 = vld [vmem:[%s220_s2] ss:$0 sm:$0xff] }
   0xa   :  { %v112_v16 = vld [vmem:[%s222_s4] ss:$0 sm:$0xff] }
   0xb   :  { %82 = vmatpush.msra.mxu1 %v57_v9 }
   0xd   :  { %83 = vmatpush.msra.mxu1 %v56_v10 }
   0xf   :  { %84 = vmatpush.msra.mxu1 %v55_v11 }
  0x11   :  { %85 = vmatpush.msra.mxu1 %v54_v12 }
  0x86   :  { %v51_v14 = vpop.f32.mrf.mxu0 }
  0x87   :  { %v52_v15 = vadd.f32 %v111_v13, %v51_v14 }
  0x89   :  { %109 = vmatmul.msk.f32.vlgmr.msra.gmra.mxu1 %vm66_vm1, %v52_v15 }
 0x106   :  { %v87_v17 = vpop.f32.mrf.mxu1 }
 0x107   :  { %v88_v18 = vadd.f32 %v112_v16, %v87_v17 }
 0x109   :  { %91 = vst.msk [vmem:[#allocation2] sm:$0xf] %vm90_vm2, %v88_v18 }
 0x10a   :  { %102 = dma.vmem_to_hbm [thread:$0]  %s98_s22, 64, %s100_s25, [#allocation3]  }
 0x10b   :  { %137 = dma.done.wait [#allocation3], 64  }
 0x10c   :  { %138 = vsyncadd [#allocation3], 4294967232 }
 0x10d   :  { %107 = vsyncpa [#allocation3], 1 }

</bundles_post_ra>
